<compile_context>
chip_gen: v7x
topology: tpu7x:2x2x1
jax: 0.10.0
libtpu: 0.0.40
codegen_flags: <defaults>
</compile_context>

<pallas_src>
import numpy as np

import jax
import jax.numpy as jnp
from jax.experimental import pallas as pl
from jax.experimental.pallas import tpu as pltpu


def _round_up(a, b):
    return (a + b - 1) // b * b


def _mmd_tile_kernel(i_ref, j_ref, zr_ref, zc_ref, sqr_ref, sqc_ref,
                     wr_ref, wc_ref, scale_ref, out_ref):
    """Weighted RBF-kernel sum over one (t x t) tile of K.

    i_ref, j_ref : SMEM int32 tile-pair tables (consumed by index_maps only).
    zr_ref       : (t, d_pad) row block of Z.
    zc_ref       : (t, d_pad) col block of Z.
    sqr_ref      : (t, 1) f32 row squared norms.
    sqc_ref      : (1, t) f32 col squared norms.
    wr_ref       : (t, 1) f32 row weights (+1/nx, -1/ny, 0 for padding).
    wc_ref       : (1, t) f32 col weights.
    scale_ref    : (1,)  f32 in SMEM: -1 / (4 * bandwidth).
    out_ref      : (1, 1, 1) f32 per-step partial sum.
    """
    del i_ref, j_ref  # only used by the BlockSpec index_maps

    # Pairwise squared distances for this tile: MXU gram + precomputed norms.
    gram = jax.lax.dot_general(
        zr_ref[...], zc_ref[...], (((1,), (1,)), ((), ())),
        preferred_element_type=jnp.float32)                      # (t, t)
    l2 = jnp.maximum(sqr_ref[...] + sqc_ref[...] - 2.0 * gram, 0.0)

    # One EUP exp; multipliers [0.25, 0.5, 1, 2, 4] become u^(4/m):
    # K = u + u^2 + u^4 + u^8 + u^16 via incremental VPU squarings.
    u = jnp.exp(l2 * scale_ref[0])
    v = u * u                       # u^2
    acc = u + v
    v = v * v                       # u^4
    acc = acc + v
    v = v * v                       # u^8
    acc = acc + v
    v = v * v                       # u^16
    acc = acc + v

    # Weighted reduction: sum_ab w_row[a] * w_col[b] * K[a, b].
    kw = jnp.sum(acc * wc_ref[...], axis=1, keepdims=True)       # (t, 1)
    tile_sum = jnp.sum(kw * wr_ref[...])
    out_ref[...] = jnp.full((1, 1, 1), tile_sum, dtype=jnp.float32)


def mmd_loss(X, Y, *, tile=256):
    """MMDLoss.forward(X, Y) -> scalar (float32)."""
    nx, d = X.shape
    ny, d2 = Y.shape
    assert d == d2, "feature dims must match"
    assert nx > 0 and ny > 0, "X and Y must both be non-empty"
    n = nx + ny

    store_dtype = jnp.bfloat16 if X.dtype == jnp.bfloat16 else jnp.float32
    itemsize = jnp.dtype(store_dtype).itemsize
    d_pad = _round_up(d, 128)

    # ---- tile size selection (VMEM-aware; v7x has only 64 MiB) ----------
    n8 = _round_up(n, 8)
    if n8 <= tile:
        t = n8                                  # single row/col tile
    else:
        t = 512 if tile >= 512 else (256 if tile >= 256 else 128)
        while t > 128 and (4 * t * d_pad * itemsize + 8 * t * t * 4) > (24 << 20):
            t //= 2
    n_pad = _round_up(n, t)
    num_t = n_pad // t

    # ---- Z, per-row norms, per-row weights, analytic bandwidth ----------
    zf = jnp.concatenate([X, Y], axis=0).astype(jnp.float32)      # (n, d)
    sq_real = jnp.sum(zf * zf, axis=1)                            # (n,)

    # sum(L2) = 2*N*sum|z_i|^2 - 2*|sum_i z_i|^2   (O(N*D) prepass).
    col_sum = jnp.sum(zf, axis=0)
    sum_l2 = 2.0 * n * jnp.sum(sq_real) - 2.0 * jnp.sum(col_sum * col_sum)
    bandwidth = sum_l2 / float(n * n - n)
    scale = jnp.reshape(-0.25 / bandwidth, (1,)).astype(jnp.float32)

    z = jnp.pad(jnp.concatenate([X, Y], axis=0).astype(store_dtype),
                ((0, n_pad - n), (0, d_pad - d)))                 # (n_pad, d_pad)
    sq = jnp.pad(sq_real, (0, n_pad - n)).astype(jnp.float32)     # (n_pad,)
    w = jnp.pad(jnp.concatenate(
        [jnp.full((nx,), 1.0 / nx, jnp.float32),
         jnp.full((ny,), -1.0 / ny, jnp.float32)]), (0, n_pad - n))
    sq_col, sq_row = sq[:, None], sq[None, :]
    w_col, w_row = w[:, None], w[None, :]

    # ---- upper-triangular tile schedule, split into 2 balanced chunks ----
    pairs = [(i, j) for i in range(num_t) for j in range(i, num_t)]
    n_real = len(pairs)
    n_chunks = 2 if n_real >= 2 else 1
    spc = -(-n_real // n_chunks)                 # steps per chunk
    total = n_chunks * spc
    i_of = np.zeros((total,), np.int32)
    j_of = np.zeros((total,), np.int32)
    fac = np.zeros((total,), np.float32)         # 0 = schedule padding
    for s, (i, j) in enumerate(pairs):
        i_of[s], j_of[s] = i, j
        fac[s] = 1.0 if i == j else 2.0

    # ---- BlockSpecs (index_maps get the two scalar-prefetch tables) ------
    def row_blk(p, k, i_t, j_t):
        return (i_t[p * spc + k], 0)

    def col_blk(p, k, i_t, j_t):
        return (j_t[p * spc + k], 0)

    def col_vec(p, k, i_t, j_t):
        return (0, j_t[p * spc + k])

    def out_map(p, k, i_t, j_t):
        return (p * spc + k, 0, 0)

    grid_spec = pltpu.PrefetchScalarGridSpec(
        num_scalar_prefetch=2,
        grid=(n_chunks, spc),
        in_specs=[
            pl.BlockSpec((t, d_pad), row_blk),   # Z row tile
            pl.BlockSpec((t, d_pad), col_blk),   # Z col tile
            pl.BlockSpec((t, 1), row_blk),       # row squared norms
            pl.BlockSpec((1, t), col_vec),       # col squared norms
            pl.BlockSpec((t, 1), row_blk),       # row weights
            pl.BlockSpec((1, t), col_vec),       # col weights
            pl.BlockSpec(memory_space=pltpu.MemorySpace.SMEM),  # scale scalar
        ],
        out_specs=pl.BlockSpec((1, 1, 1), out_map),
    )

    vmem_need = (4 * t * d_pad * itemsize        # double-buffered z tiles
                 + 8 * t * t * 4                 # (t,t) f32 intermediates
                 + 16 * t * 4                    # norm / weight strips
                 + (2 << 20))
    vmem_limit = int(min(max(2 * vmem_need, 32 << 20), 64 << 20))

    cost = pl.CostEstimate(
        flops=int(n_real * (2 * t * t * d_pad + 12 * t * t)),
        transcendentals=int(n_real * t * t),
        bytes_accessed=int(2 * n_real * t * d_pad * itemsize
                           + n_pad * d_pad * itemsize + total * 4),
    )

    partials = pl.pallas_call(
        _mmd_tile_kernel,
        grid_spec=grid_spec,
        out_shape=jax.ShapeDtypeStruct((total, 1, 1), jnp.float32),
        compiler_params=pltpu.CompilerParams(
            dimension_semantics=("parallel", "arbitrary"),
            vmem_limit_bytes=vmem_limit),
        cost_estimate=cost,
    )(jnp.asarray(i_of), jnp.asarray(j_of),
      z, z, sq_col, sq_row, w_col, w_row, scale)

    # Tiny O(#tiles) combine: doubles off-diagonal tiles (K symmetric) and
    # zeroes schedule-padding steps.
    return jnp.dot(partials.reshape(-1), jnp.asarray(fac))


def _mmd_reference(X, Y):
    """Pure-JAX mirror of the PyTorch module (sanity check only)."""
    z = jnp.concatenate([X, Y], axis=0).astype(jnp.float32)
    n = z.shape[0]
    nx = X.shape[0]
    sq = jnp.sum(z * z, axis=1, keepdims=True)
    l2 = jnp.maximum(sq + sq.T - 2.0 * (z @ z.T), 0.0)
    bandwidth = jnp.sum(l2) / float(n * n - n)
    mults = jnp.asarray([0.25, 0.5, 1.0, 2.0, 4.0], jnp.float32)
    k = jnp.sum(jnp.exp(-l2[None, :, :] / (bandwidth * mults)[:, None, None]),
                axis=0)
    xx = jnp.mean(k[:nx, :nx])
    xy = jnp.mean(k[:nx, nx:])
    yy = jnp.mean(k[nx:, nx:])
    return xx - 2.0 * xy + yy


if __name__ == "__main__":
    key = jax.random.PRNGKey(0)
    kx, ky = jax.random.split(key)
    # Small shapes: 8 samples each, 32 features.
    X = jax.random.normal(kx, (8, 32), dtype=jnp.float32)
    Y = jax.random.normal(ky, (8, 32), dtype=jnp.float32) + 0.5

    mmd = jax.jit(mmd_loss)
    result = mmd(X, Y)
    jax.block_until_ready(result)

    ref = _mmd_reference(X, Y)
    err = abs(float(result) - float(ref))
    assert err < 1e-4 * max(1.0, abs(float(ref))), (float(result), float(ref))
    print("KERNEL_OK")
</pallas_src>

<mosaic_0001>
module attributes {stable_mosaic.version = 11 : i64} {
  func.func @_mmd_tile_kernel(%arg0: i32, %arg1: i32, %arg2: memref<1xi32, #tpu.memory_space<smem>>, %arg3: memref<1xi32, #tpu.memory_space<smem>>, %arg4: memref<16x128xf32, #tpu.memory_space<vmem>>, %arg5: memref<16x128xf32, #tpu.memory_space<vmem>>, %arg6: memref<16x1xf32, #tpu.memory_space<vmem>>, %arg7: memref<1x16xf32, #tpu.memory_space<vmem>>, %arg8: memref<16x1xf32, #tpu.memory_space<vmem>>, %arg9: memref<1x16xf32, #tpu.memory_space<vmem>>, %arg10: memref<1xf32, #tpu.memory_space<smem>>, %arg11: memref<1x1x1xf32, #tpu.memory_space<vmem>>) attributes {dimension_semantics = [#tpu.dimension_semantics<parallel>, #tpu.dimension_semantics<arbitrary>], iteration_bounds = array<i64: 1, 1>, scalar_prefetch = 2 : i64, scratch_operands = 0 : i64, tpu.core_type = #tpu.core_type<tc>, window_params = [{transform_indices = @transform_0, window_bounds = array<i64: 16, 128>}, {transform_indices = @transform_1, window_bounds = array<i64: 16, 128>}, {transform_indices = @transform_2, window_bounds = array<i64: 16, 1>}, {transform_indices = @transform_3, window_bounds = array<i64: 1, 16>}, {transform_indices = @transform_4, window_bounds = array<i64: 16, 1>}, {transform_indices = @transform_5, window_bounds = array<i64: 1, 16>}, {transform_indices = @transform_6, window_bounds = array<i64: 1>}, {transform_indices = @transform_7, window_bounds = array<i64: 1, 1, 1>}]} {
    %c0 = arith.constant 0 : index
    %c0_0 = arith.constant 0 : index
    %0 = vector.load %arg4[%c0, %c0_0] : memref<16x128xf32, #tpu.memory_space<vmem>>, vector<16x128xf32>
    %c0_1 = arith.constant 0 : index
    %c0_2 = arith.constant 0 : index
    %1 = vector.load %arg5[%c0_1, %c0_2] : memref<16x128xf32, #tpu.memory_space<vmem>>, vector<16x128xf32>
    %cst = arith.constant dense<0.000000e+00> : vector<16x16xf32>
    %2 = tpu.matmul %0, %1, %cst {dimension_numbers = #tpu.dot_dimension_numbers<[1], [1], [0], [0], [0, 0, 1, 0], [], []>} : vector<16x128xf32>, vector<16x128xf32>, vector<16x16xf32> -> vector<16x16xf32>
    %c0_3 = arith.constant 0 : index
    %c0_4 = arith.constant 0 : index
    %3 = vector.load %arg6[%c0_3, %c0_4] : memref<16x1xf32, #tpu.memory_space<vmem>>, vector<16x1xf32>
    %c0_5 = arith.constant 0 : index
    %c0_6 = arith.constant 0 : index
    %4 = vector.load %arg7[%c0_5, %c0_6] : memref<1x16xf32, #tpu.memory_space<vmem>>, vector<1x16xf32>
    %5 = vector.broadcast %3 : vector<16x1xf32> to vector<16x16xf32>
    %6 = vector.broadcast %4 : vector<1x16xf32> to vector<16x16xf32>
    %7 = arith.addf %5, %6 : vector<16x16xf32>
    %cst_7 = arith.constant 2.000000e+00 : f32
    %8 = vector.broadcast %cst_7 : f32 to vector<16x16xf32>
    %9 = arith.mulf %8, %2 : vector<16x16xf32>
    %10 = arith.subf %7, %9 : vector<16x16xf32>
    %cst_8 = arith.constant 0.000000e+00 : f32
    %11 = vector.broadcast %cst_8 : f32 to vector<16x16xf32>
    %12 = arith.maximumf %10, %11 : vector<16x16xf32>
    %c0_9 = arith.constant 0 : index
    %13 = memref.load %arg10[%c0_9] : memref<1xf32, #tpu.memory_space<smem>>
    %14 = vector.broadcast %13 : f32 to vector<16x16xf32>
    %15 = arith.mulf %12, %14 : vector<16x16xf32>
    %16 = math.exp %15 : vector<16x16xf32>
    %17 = arith.mulf %16, %16 : vector<16x16xf32>
    %18 = arith.addf %16, %17 : vector<16x16xf32>
    %19 = arith.mulf %17, %17 : vector<16x16xf32>
    %20 = arith.addf %18, %19 : vector<16x16xf32>
    %21 = arith.mulf %19, %19 : vector<16x16xf32>
    %22 = arith.addf %20, %21 : vector<16x16xf32>
    %23 = arith.mulf %21, %21 : vector<16x16xf32>
    %24 = arith.addf %22, %23 : vector<16x16xf32>
    %c0_10 = arith.constant 0 : index
    %c0_11 = arith.constant 0 : index
    %25 = vector.load %arg9[%c0_10, %c0_11] : memref<1x16xf32, #tpu.memory_space<vmem>>, vector<1x16xf32>
    %26 = vector.broadcast %25 : vector<1x16xf32> to vector<16x16xf32>
    %27 = arith.mulf %24, %26 : vector<16x16xf32>
    %cst_12 = arith.constant dense<0.000000e+00> : vector<16xf32>
    %28 = vector.multi_reduction <add>, %27, %cst_12 [1] : vector<16x16xf32> to vector<16xf32>
    %29 = vector.shape_cast %28 : vector<16xf32> to vector<16x1xf32>
    %c0_13 = arith.constant 0 : index
    %c0_14 = arith.constant 0 : index
    %30 = vector.load %arg8[%c0_13, %c0_14] : memref<16x1xf32, #tpu.memory_space<vmem>>, vector<16x1xf32>
    %31 = arith.mulf %29, %30 : vector<16x1xf32>
    %32 = vector.shape_cast %31 : vector<16x1xf32> to vector<1x16x1xf32>
    %cst_15 = arith.constant dense<0.000000e+00> : vector<1xf32>
    %33 = vector.multi_reduction <add>, %32, %cst_15 [1, 2] : vector<1x16x1xf32> to vector<1xf32>
    %34 = vector.shape_cast %33 : vector<1xf32> to vector<1x1x1xf32>
    %35 = vector.extract %34[0, 0, 0] : f32 from vector<1x1x1xf32>
    %36 = vector.broadcast %35 : f32 to vector<1x1x1xf32>
    %c0_16 = arith.constant 0 : index
    %c0_17 = arith.constant 0 : index
    %c0_18 = arith.constant 0 : index
    %37 = vector.load %arg11[%c0_16, %c0_17, %c0_18] : memref<1x1x1xf32, #tpu.memory_space<vmem>>, vector<1x1x1xf32>
    tpu.vector_store %arg11[%c0_16, %c0_17, %c0_18], %36 {strides = array<i32>} : memref<1x1x1xf32, #tpu.memory_space<vmem>>, vector<1x1x1xf32>,
    return
  }
  func.func @transform_0(%arg0: i32, %arg1: i32, %arg2: memref<1xi32, #tpu.memory_space<smem>>, %arg3: memref<1xi32, #tpu.memory_space<smem>>) -> (i32, i32) {
    %c1_i32 = arith.constant 1 : i32
    %0 = arith.muli %arg0, %c1_i32 : i32
    %1 = arith.addi %0, %arg1 : i32
    %2 = arith.index_cast %1 : i32 to index
    %3 = memref.load %arg2[%2] : memref<1xi32, #tpu.memory_space<smem>>
    %c0_i32 = arith.constant 0 : i32
    %c0_i32_0 = arith.constant 0 : i32
    return %3, %c0_i32 : i32, i32
  }
  func.func @transform_1(%arg0: i32, %arg1: i32, %arg2: memref<1xi32, #tpu.memory_space<smem>>, %arg3: memref<1xi32, #tpu.memory_space<smem>>) -> (i32, i32) {
    %c1_i32 = arith.constant 1 : i32
    %0 = arith.muli %arg0, %c1_i32 : i32
    %1 = arith.addi %0, %arg1 : i32
    %2 = arith.index_cast %1 : i32 to index
    %3 = memref.load %arg3[%2] : memref<1xi32, #tpu.memory_space<smem>>
    %c0_i32 = arith.constant 0 : i32
    %c0_i32_0 = arith.constant 0 : i32
    return %3, %c0_i32 : i32, i32
  }
  func.func @transform_2(%arg0: i32, %arg1: i32, %arg2: memref<1xi32, #tpu.memory_space<smem>>, %arg3: memref<1xi32, #tpu.memory_space<smem>>) -> (i32, i32) {
    %c1_i32 = arith.constant 1 : i32
    %0 = arith.muli %arg0, %c1_i32 : i32
    %1 = arith.addi %0, %arg1 : i32
    %2 = arith.index_cast %1 : i32 to index
    %3 = memref.load %arg2[%2] : memref<1xi32, #tpu.memory_space<smem>>
    %c0_i32 = arith.constant 0 : i32
    %c0_i32_0 = arith.constant 0 : i32
    return %3, %c0_i32 : i32, i32
  }
  func.func @transform_3(%arg0: i32, %arg1: i32, %arg2: memref<1xi32, #tpu.memory_space<smem>>, %arg3: memref<1xi32, #tpu.memory_space<smem>>) -> (i32, i32) {
    %c1_i32 = arith.constant 1 : i32
    %0 = arith.muli %arg0, %c1_i32 : i32
    %1 = arith.addi %0, %arg1 : i32
    %2 = arith.index_cast %1 : i32 to index
    %3 = memref.load %arg3[%2] : memref<1xi32, #tpu.memory_space<smem>>
    %c0_i32 = arith.constant 0 : i32
    %c0_i32_0 = arith.constant 0 : i32
    return %c0_i32, %3 : i32, i32
  }
  func.func @transform_4(%arg0: i32, %arg1: i32, %arg2: memref<1xi32, #tpu.memory_space<smem>>, %arg3: memref<1xi32, #tpu.memory_space<smem>>) -> (i32, i32) {
    %c1_i32 = arith.constant 1 : i32
    %0 = arith.muli %arg0, %c1_i32 : i32
    %1 = arith.addi %0, %arg1 : i32
    %2 = arith.index_cast %1 : i32 to index
    %3 = memref.load %arg2[%2] : memref<1xi32, #tpu.memory_space<smem>>
    %c0_i32 = arith.constant 0 : i32
    %c0_i32_0 = arith.constant 0 : i32
    return %3, %c0_i32 : i32, i32
  }
  func.func @transform_5(%arg0: i32, %arg1: i32, %arg2: memref<1xi32, #tpu.memory_space<smem>>, %arg3: memref<1xi32, #tpu.memory_space<smem>>) -> (i32, i32) {
    %c1_i32 = arith.constant 1 : i32
    %0 = arith.muli %arg0, %c1_i32 : i32
    %1 = arith.addi %0, %arg1 : i32
    %2 = arith.index_cast %1 : i32 to index
    %3 = memref.load %arg3[%2] : memref<1xi32, #tpu.memory_space<smem>>
    %c0_i32 = arith.constant 0 : i32
    %c0_i32_0 = arith.constant 0 : i32
    return %c0_i32, %3 : i32, i32
  }
  func.func @transform_6(%arg0: i32, %arg1: i32, %arg2: memref<1xi32, #tpu.memory_space<smem>>, %arg3: memref<1xi32, #tpu.memory_space<smem>>) -> i32 {
    %c0_i32 = arith.constant 0 : i32
    %c0_i32_0 = arith.constant 0 : i32
    return %c0_i32 : i32
  }
  func.func @transform_7(%arg0: i32, %arg1: i32, %arg2: memref<1xi32, #tpu.memory_space<smem>>, %arg3: memref<1xi32, #tpu.memory_space<smem>>) -> (i32, i32, i32) {
    %c1_i32 = arith.constant 1 : i32
    %0 = arith.muli %arg0, %c1_i32 : i32
    %1 = arith.addi %0, %arg1 : i32
    %c0_i32 = arith.constant 0 : i32
    %c0_i32_0 = arith.constant 0 : i32
    %c0_i32_1 = arith.constant 0 : i32
    return %1, %c0_i32, %c0_i32_0 : i32, i32, i32
  }
}

</mosaic_0001>

<bundles_post_ra>
// kernel: mmd_loss.1
= control target key start
LH: loop header
LB: loop body
LE: loop exit
PB: predicated region body
PF: predicated region fallthrough
CT: control target
= control target key end

     0   :  { %s556_s0 = inlined_call_operand.<no memory space> [shape: s32[1], index: 0, kind: input, shape index: {}, may-alias: {0,1}]   ;;  %s557_s1 = inlined_call_operand.<no memory space> [shape: s32[1], index: 1, kind: input, shape index: {}, may-alias: {0,1}]   ;;  %s558_s2 = inlined_call_operand.vmem [shape: f32[16,128], index: 2, kind: input, shape index: {}, may-alias: {2,3}]   ;;  %s559_s3 = inlined_call_operand.vmem [shape: f32[16,128], index: 3, kind: input, shape index: {}, may-alias: {2,3}]   ;;  %s560_s4 = inlined_call_operand.vmem [shape: f32[16,1], index: 4, kind: input, shape index: {}]   ;;  %s561_s5 = inlined_call_operand.vmem [shape: f32[1,16], index: 5, kind: input, shape index: {}]   ;;  %s562_s6 = inlined_call_operand.vmem [shape: f32[16,1], index: 6, kind: input, shape index: {}]   ;;  %s563_s7 = inlined_call_operand.vmem [shape: f32[1,16], index: 7, kind: input, shape index: {}]   ;;  %s564_s8 = inlined_call_operand.<no memory space> [shape: f32[1], index: 8, kind: input, shape index: {}]   ;;  %s565_s9 = inlined_call_operand.hbm [shape: f32[1,1,1], index: 9, kind: output, shape index: {}]  }
   0x1   :  { %s394_s11 = sshll.u32 %s557_s1, 1  ;;  %s392_s14 = sshll.u32 %s556_s0, 1 }
   0x2   :  { %17 = vsyncpa [#allocation7], 0  ;;  %p137_p0 = scmp.lt.s32.totalorder %s394_s11, 1  ;;  %p127_p1 = scmp.lt.s32.totalorder %s392_s14, 1  ;;  %v450_v0 = vmov 0   ;;  %v286_v18 = vstv %s564_s8  ;;  %vm318_vm0 = vcmask 130048  }
   0x3   :  { %421 = vset.pattern.permute.xlu0 %v450_v0  ;;  %p156_p2 = scmp.lt.s32.totalorder %s557_s1, 0  ;;  %vm329_vm1 = vcmask 7168   ;;  %vm343_vm2 = vcmask 0  }
   0x4   :  { %s567_s11 = smov (!%p137_p0, %s394_s11), 1  ;;  %s569_s14 = smov (!%p127_p1, %s392_s14), 1 }
   0x5   :  { %s395_s15 = sshll.u32 %s567_s11, 3  ;;  %s511_s19 = sshll.u32 %s569_s14, 3 }
   0x6   :  { %s140_s18 = scalar_lea.vmem %s559_s3, %s395_s15  ;;  %s130_s21 = scalar_lea.vmem %s558_s2, %s511_s19 }
   0x7   :  { %v181_v1 = vld [vmem:[%s140_s18] sm:$0xff]  ;;  %v182_v2 = vld [vmem:[%s140_s18 + $0x8] sm:$0xff]  ;;  %s150_s24 = scalar_lea.vmem %s560_s4, %s511_s19  ;;  %s571_s1 = smov (!%p156_p2, %s557_s1), 0 }
   0x8   :  { %v413_v3 = vpack.c.bf16 %v182_v2, %v181_v1  ;;  %v179_v4 = vld [vmem:[%s130_s21] sm:$0xff]  ;;  %v259_v6 = vld [vmem:[%s150_s24 + $0x8] sm:$0xff]  ;;  %s158_s28 = scalar_lea.vmem %s561_s5, %s571_s1  ;;  %s175_s10 = scalar_lea.vmem %s563_s7, %s571_s1 }
   0x9   :  { %v258_v5 = vld [vmem:[%s150_s24] sm:$0xff]  ;;  %410 = vmatprep.mubr.f32.mxu0 %v179_v4  ;;  %v180_v7 = vld [vmem:[%s130_s21 + $0x8] sm:$0xff]  ;;  %s167_s1 = scalar_lea.vmem %s562_s6, %s511_s19  ;;  %s451_s6 = smov [#allocation6]  }
   0xa   :  { %263 = vperm.xlu0 %421, %v258_v5   ;;  %414 = vmatprep.subr.bf16.mxu0 %v413_v3  ;;  %v400_v9 = vld [vmem:[%s158_s28] ss:$0 sm:$0xff]  ;;  %v326_v51 = vld [vmem:[%s167_s1 + $0x8] sm:$0xff]  ;;  %s354_s7 = sshll.u32 %s451_s6, 4  ;;  %s355_s7 = int_to_ptr.vmem [resolvable:$true] %s354_s7 }
   0xb   :  { %416 = vmatpush3.bf16.xpose.msra.mxu0 %v413_v3  ;;  %v401_v42 = vld [vmem:[%s175_s10] ss:$0 sm:$0xff]  ;;  %s426_s14 = scalar_lea.vmem %s355_s7, 16  ;;  %s430_s15 = scalar_lea.vmem %s355_s7, 32 }
   0xc   :  { %v325_v49 = vld [vmem:[%s167_s1] sm:$0xff]  ;;  %p427_p3 = scmp.ne.s32.totalorder %s355_s7, %s426_s14  ;;  %p431_p4 = scmp.lt.s32.totalorder %s355_s7, %s355_s7 }
   0xd   :  { %p432_p5 = scmp.lt.s32.totalorder %s430_s15, %s426_s14 }
   0xe   :  { %268 = vperm.xlu0 %421, %v259_v6  }
   0xf   :  { %p433_p6 = por %p432_p5, %p431_p4 }
  0x11   :  { %p434_p7 = pnand %p433_p6, %p427_p3 }
  0x12   :  { %411 = vmatmul.mubr.f32.vlgmr.msra.gmra.mrb[0].mxu0 %v180_v7 }
  0x89   :  { %v264_v8 = vpop.permute.xlu0 %263 }
  0x8a   :  { %v277_v12 = vadd.f32 %v400_v9, %v264_v8 }
  0x8d   :  { %v269_v10 = vpop.permute.xlu0 %268 }
  0x8e   :  { %v278_v11 = vadd.f32 %v400_v9, %v269_v10 }
  0xe5   :  { %v412_v13 = vpop.f32.mrb[0].mxu0 }
  0xe6   :  { %v280_v14 = vmul.f32 2.0, %v412_v13  ;;  %v249_v15 = vpop.f32.mrb[1].mxu0 }
  0xe7   :  { %v279_v16 = vmul.f32 2.0, %v249_v15 }
  0xe8   :  { %v282_v17 = vsub.f32 %v278_v11, %v280_v14 }
  0xe9   :  { %v281_v19 = vsub.f32 %v277_v12, %v279_v16 }
  0xea   :  { %v284_v20 = vmax.f32 %v282_v17, 0.0 }
  0xeb   :  { %v283_v21 = vmax.f32 %v281_v19, 0.0 }
  0xec   :  { %v288_v22 = vmul.f32 %v286_v18, %v284_v20 }
  0xed   :  { %v287_v23 = vmul.f32 %v286_v18, %v283_v21 }
  0xee   :  { %v291_v24 = vmul.f32 1.442695, %v288_v22 }
  0xef   :  { %v289_v25 = vmul.f32 1.442695, %v287_v23 }
  0xf0   :  { %422 = vpow2.f32 %v291_v24 }
  0xf1   :  { %424 = vpow2.f32 %v289_v25 }
  0xfa   :  { %v423_v26 = vpop.eup %422 }
  0xfb   :  { %v425_v27 = vpop.eup %424  ;;  %v294_v28 = vmul.f32 %v423_v26, %v423_v26 }
  0xfc   :  { %v293_v29 = vmul.f32 %v425_v27, %v425_v27 }
  0xfd   :  { %v296_v30 = vadd.f32 %v423_v26, %v294_v28  ;;  %v298_v31 = vmul.f32 %v294_v28, %v294_v28 }
  0xfe   :  { %v295_v32 = vadd.f32 %v425_v27, %v293_v29  ;;  %v297_v33 = vmul.f32 %v293_v29, %v293_v29 }
  0xff   :  { %v300_v34 = vadd.f32 %v298_v31, %v296_v30  ;;  %v302_v35 = vmul.f32 %v298_v31, %v298_v31 }
 0x100   :  { %v299_v36 = vadd.f32 %v297_v33, %v295_v32  ;;  %v301_v37 = vmul.f32 %v297_v33, %v297_v33 }
 0x101   :  { %v304_v38 = vadd.f32 %v302_v35, %v300_v34  ;;  %v306_v39 = vmul.f32 %v302_v35, %v302_v35 }
 0x102   :  { %v303_v40 = vadd.f32 %v301_v37, %v299_v36  ;;  %v305_v41 = vmul.f32 %v301_v37, %v301_v37 }
 0x103   :  { %v308_v44 = vadd.f32 %v306_v39, %v304_v38 }
 0x104   :  { %v307_v43 = vadd.f32 %v305_v41, %v303_v40 }
 0x105   :  { %v317_v47 = vmul.f32 %v401_v42, %v308_v44 }
 0x106   :  { %v316_v45 = vmul.f32 %v401_v42, %v307_v43 }
 0x107   :  { %v322_v48 = vsel %vm318_vm0, %v317_v47, 0.0 }
 0x108   :  { %v319_v46 = vsel %vm318_vm0, %v316_v45, 0.0 }
 0x109   :  { %320 = vadd.xlane.f32.xlu1 %v319_v46 }
 0x10d   :  { %323 = vadd.xlane.f32.xlu1 %v322_v48 }
 0x196   :  { %v321_v50 = vpop.xlane.xlu1 %320 }
 0x197   :  { %v327_v52 = vmul.f32 %v325_v49, %v321_v50 }
 0x199   :  { %v330_v55 = vsel %vm329_vm1, %v327_v52, 0.0 }
 0x19a   :  { %v324_v53 = vpop.xlane.xlu1 %323 }
 0x19b   :  { %v328_v54 = vmul.f32 %v326_v51, %v324_v53 }
 0x19d   :  { %v331_v56 = vsel %vm329_vm1, %v328_v54, 0.0 }
 0x19e   :  { %v332_v57 = vadd.f32 %v331_v56, %v330_v55 }
 0x1a0   :  { %333 = vadd.xlane.f32.xlu0 %v332_v57 }
 0x22d   :  { %v334_v58 = vpop.xlane.xlu0 %333 }
 0x22e   :  { %v335_v59 = vrot.slane %v334_v58, 4 }
 0x230   :  { %v336_v60 = vadd.f32 %v335_v59, %v334_v58 }
 0x232   :  { %v337_v61 = vrot.slane %v336_v60, 2 }
 0x234   :  { %v338_v62 = vadd.f32 %v337_v61, %v336_v60 }
 0x236   :  { %v339_v63 = vrot.slane %v338_v62, 1 }
 0x238   :  { %v340_v0 = vadd.f32 %v339_v63, %v338_v62 }
 0x23a   :  { %417 = vpush %v340_v0 }
 0x26b   :  { %s418_s13 = spop %417 }
 0x26c   :  { %v342_v1 = vstv %s418_s13 }
 0x26d   :  { %344 = vst.msk [vmem:[#allocation6] sm:$0x1] %vm343_vm2, %v342_v1 }
 0x26e   :  { %437 = shalt.err (!%p434_p7)
}
 0x26f   :  { %s438_s18 = scalar_lea.hbm %s565_s9, 16 }
 0x270   :  { %p439_p8 = scmp.ne.s32.totalorder %s565_s9, %s438_s18  ;;  %p442_p9 = scmp.lt.u32.totalorder %s438_s18, %s565_s9 }
 0x272   :  { %p444_p10 = pnand %p442_p9, %p439_p8 }
 0x274   :  { %447 = shalt.err (!%p444_p10)
}
 0x275   :  { %357 = dma.vmem_to_hbm [thread:$0]  %s355_s7, 16, %s565_s9, [#allocation7]  }
 0x276   :  { %448 = dma.done.wait [#allocation7], 16  }
 0x277   :  { %449 = vsyncadd [#allocation7], 4294967280 }
 0x278   :  { %361 = vsyncpa [#allocation7], 1 }

</bundles_post_ra>
